<compile_context>
chip_gen: v7x
topology: tpu7x:2x2x1
jax: 0.10.0
libtpu: 0.0.40
codegen_flags: <defaults>
</compile_context>

<pallas_src>
import functools

import jax
import jax.numpy as jnp
from jax.experimental import pallas as pl
from jax.experimental.pallas import tpu as pltpu

EPS = 1e-7
WH_MAX = 1e7          # torch: clamp(min=1e-07, max=10000000.0)
LANES = 128
SUBLANES = 8


def _gwd_loss_kernel(chan_ref, out_ref, *,
                     fun, tau, alpha, scale_const, n_boxes, tile_rows):
    """chan_ref: (10, tile_rows, 128) f32 VMEM block; channel rows are
       [xp, yp, wp, hp, rp, xt, yt, wt, ht, rt].
    out_ref: (1, 1, 1) f32 accumulator block (one per 'parallel' partial)."""
    p = pl.program_id(0)
    t = pl.program_id(1)

    @pl.when(t == 0)
    def _init():
        out_ref[...] = jnp.zeros_like(out_ref)

    xp = chan_ref[0]
    yp = chan_ref[1]
    wp = jnp.clip(chan_ref[2], EPS, WH_MAX)
    hp = jnp.clip(chan_ref[3], EPS, WH_MAX)
    rp = chan_ref[4]
    xt = chan_ref[5]
    yt = chan_ref[6]
    wt = jnp.clip(chan_ref[7], EPS, WH_MAX)
    ht = jnp.clip(chan_ref[8], EPS, WH_MAX)
    rt = chan_ref[9]

    def sigma(w, h, r):
        # Sigma = R diag((w/2)^2, (h/2)^2) R^T  (2x2 symmetric), expanded.
        c = jnp.cos(r)
        s = jnp.sin(r)
        sw = jnp.square(0.5 * w)
        sh = jnp.square(0.5 * h)
        s11 = c * c * sw + s * s * sh
        s12 = c * s * (sw - sh)
        s22 = s * s * sw + c * c * sh
        return s11, s12, s22

    p11, p12, p22 = sigma(wp, hp, rp)
    t11, t12, t22 = sigma(wt, ht, rt)

    # ||xy_p - xy_t||^2
    xy_distance = jnp.square(xp - xt) + jnp.square(yp - yt)

    # Tr(Sigma_p) + Tr(Sigma_t)
    whr_distance = (p11 + p22) + (t11 + t22)

    # Tr(Sigma_p @ Sigma_t)  (both symmetric)
    _t_tr = p11 * t11 + 2.0 * p12 * t12 + p22 * t22

    # sqrt(clamp(det(Sigma_p) * det(Sigma_t)))
    det_p = p11 * p22 - p12 * p12
    det_t = t11 * t22 - t12 * t12
    _t_det_sqrt = jnp.sqrt(jnp.maximum(det_p * det_t, EPS))

    whr_distance = whr_distance - 2.0 * jnp.sqrt(
        jnp.maximum(_t_tr + 2.0 * _t_det_sqrt, EPS))

    distance = jnp.sqrt(
        jnp.maximum(xy_distance + alpha * alpha * whr_distance, EPS))

    # normalize=True:  distance / (2 * _t_det_sqrt**0.25)
    # == distance * 0.5 * rsqrt(sqrt(_t_det_sqrt)).
    # (torch inserts clamp(1e-7) after each sqrt; inert since
    #  _t_det_sqrt >= sqrt(EPS) ~ 3.16e-4.)
    distance = distance * (0.5 * jax.lax.rsqrt(jnp.sqrt(_t_det_sqrt)))

    # postprocess (fun / tau are static Python values)
    if fun == 'log1p':
        distance = jnp.log1p(distance)
    elif fun == 'sqrt':
        distance = jnp.sqrt(jnp.maximum(distance, EPS))
    elif fun == 'none':
        pass
    else:
        raise ValueError(f'Invalid non-linear function {fun}')
    if tau >= 1.0:
        distance = 1.0 - 1.0 / (tau + distance)

    # mask out padded boxes (flat index >= true N)
    row_start = (p * pl.num_programs(1) + t) * tile_rows
    row_ids = jax.lax.broadcasted_iota(jnp.int32, distance.shape, 0)
    lane_ids = jax.lax.broadcasted_iota(jnp.int32, distance.shape, 1)
    flat_idx = (row_start + row_ids) * LANES + lane_ids
    distance = jnp.where(flat_idx < n_boxes, distance, 0.0)

    # accumulate partial sum for this 'parallel' slice
    out_ref[...] = out_ref[...] + jnp.sum(distance)

    # finalize: fold loss_weight / N into the accumulated sum once
    @pl.when(t == pl.num_programs(1) - 1)
    def _finalize():
        out_ref[...] = out_ref[...] * scale_const


def gd_loss_gwd(pred, target, *, fun='log1p', tau=0.0, alpha=1.0,
                reduction='mean', loss_weight=1.0,
                block_rows=256, num_partials=2):
    """GDLoss('gwd').forward(pred, target) with weight=None, avg_factor=None.

    pred, target: (N, 5) xywhr boxes. Returns a scalar (reduction='mean')."""
    assert reduction == 'mean', "kernel implements the module default reduction"
    # TODO(synk): weight / avg_factor / reduction_override paths of
    # GDLoss.forward are not implemented (module defaults only).
    n = int(pred.shape[0])
    assert n > 0, "empty box set would divide by zero in the mean"

    pred = jnp.asarray(pred, jnp.float32)
    target = jnp.asarray(target, jnp.float32)

    # One concat + one transpose for BOTH inputs (single DMA stream into the
    # kernel), then reshape to lane/sublane-dense (10, rows, 128).
    combined = jnp.concatenate([pred, target], axis=-1)          # (N, 10)

    rows = pl.cdiv(n, LANES)
    tile_rows = min(block_rows,
                    max(SUBLANES, ((rows + SUBLANES - 1) // SUBLANES) * SUBLANES))
    group = tile_rows * num_partials
    rows_padded = ((rows + group - 1) // group) * group
    n_padded = rows_padded * LANES
    tiles_per_partial = rows_padded // group

    if n_padded != n:
        combined = jnp.pad(combined, ((0, n_padded - n), (0, 0)))
    chan = combined.T.reshape(10, rows_padded, LANES)             # (10, R, 128)

    kernel = functools.partial(
        _gwd_loss_kernel, fun=fun, tau=tau, alpha=alpha,
        scale_const=float(loss_weight) / float(n),
        n_boxes=n, tile_rows=tile_rows)

    partials = pl.pallas_call(
        kernel,
        out_shape=jax.ShapeDtypeStruct((num_partials, 1, 1), jnp.float32),
        grid_spec=pltpu.PrefetchScalarGridSpec(
            num_scalar_prefetch=0,
            grid=(num_partials, tiles_per_partial),
            in_specs=[pl.BlockSpec(
                (10, tile_rows, LANES),
                lambda p, t: (0, p * tiles_per_partial + t, 0))],
            out_specs=pl.BlockSpec((1, 1, 1), lambda p, t: (p, 0, 0)),
        ),
        compiler_params=pltpu.CompilerParams(
            dimension_semantics=("parallel", "arbitrary")),
    )(chan)
    return jnp.sum(partials)


# -------- pure-JAX reference (mirrors the torch code structurally) --------
def _ref_gd_loss(pred, target, fun='log1p', tau=0.0, alpha=1.0,
                 reduction='mean', loss_weight=1.0):
    def prep(xywhr):
        xy = xywhr[..., :2]
        wh = jnp.clip(xywhr[..., 2:4], EPS, WH_MAX)
        r = xywhr[..., 4]
        c, s = jnp.cos(r), jnp.sin(r)
        R = jnp.stack((c, -s, s, c), axis=-1).reshape(-1, 2, 2)
        S = 0.5 * jax.vmap(jnp.diag)(wh)
        sigma = R @ (S @ S) @ jnp.swapaxes(R, -1, -2)
        return xy, sigma

    (xy_p, Sp), (xy_t, St) = prep(pred), prep(target)
    xy_d = jnp.sum(jnp.square(xy_p - xy_t), axis=-1)
    whr = jnp.trace(Sp, axis1=-2, axis2=-1) + jnp.trace(St, axis1=-2, axis2=-1)
    _t_tr = jnp.trace(Sp @ St, axis1=-2, axis2=-1)
    _t_det_sqrt = jnp.sqrt(jnp.maximum(
        jnp.linalg.det(Sp) * jnp.linalg.det(St), EPS))
    whr = whr - 2.0 * jnp.sqrt(jnp.maximum(_t_tr + 2.0 * _t_det_sqrt, EPS))
    dist = jnp.sqrt(jnp.maximum(xy_d + alpha * alpha * whr, EPS))
    scale = 2.0 * jnp.maximum(jnp.sqrt(jnp.maximum(
        jnp.sqrt(jnp.maximum(_t_det_sqrt, EPS)), EPS)), EPS)
    dist = dist / scale
    dist = jnp.log1p(dist)  # fun='log1p', tau=0.0 -> no tau transform
    return loss_weight * jnp.mean(dist)


def _make_boxes(key, n):
    k1, k2, k3, k4, k5, k6 = jax.random.split(key, 6)
    xy_p = 10.0 * jax.random.normal(k1, (n, 2), jnp.float32)
    wh_p = jax.random.uniform(k2, (n, 2), jnp.float32, 1.0, 10.0)
    r_p = jax.random.uniform(k3, (n, 1), jnp.float32, -3.1, 3.1)
    pred = jnp.concatenate([xy_p, wh_p, r_p], axis=-1)
    xy_t = xy_p + jax.random.normal(k4, (n, 2), jnp.float32)
    wh_t = jax.random.uniform(k5, (n, 2), jnp.float32, 1.0, 10.0)
    r_t = jax.random.uniform(k6, (n, 1), jnp.float32, -3.1, 3.1)
    target = jnp.concatenate([xy_t, wh_t, r_t], axis=-1)
    return pred, target


if __name__ == "__main__":
    key = jax.random.PRNGKey(0)
    ka, kb = jax.random.split(key, 2)

    # small case (N=8): single tile, second parallel partial fully padded/masked
    pred_s, target_s = _make_boxes(ka, 8)
    loss_s = jax.block_until_ready(gd_loss_gwd(pred_s, target_s))
    ref_s = jax.block_until_ready(_ref_gd_loss(pred_s, target_s))
    assert jnp.allclose(loss_s, ref_s, rtol=2e-3, atol=1e-5), (loss_s, ref_s)

    # larger case (N=2500): exercises multi-row tiles + lane/row padding mask
    pred_l, target_l = _make_boxes(kb, 2500)
    loss_l = jax.block_until_ready(gd_loss_gwd(pred_l, target_l))
    ref_l = jax.block_until_ready(_ref_gd_loss(pred_l, target_l))
    assert jnp.allclose(loss_l, ref_l, rtol=2e-3, atol=1e-5), (loss_l, ref_l)

    print("KERNEL_OK")
</pallas_src>

<mosaic_0001>
module attributes {stable_mosaic.version = 11 : i64} {
  func.func @_gwd_loss_kernel(%arg0: i32, %arg1: i32, %arg2: memref<10x8x128xf32, #tpu.memory_space<vmem>>, %arg3: memref<1x1x1xf32, #tpu.memory_space<vmem>>) attributes {dimension_semantics = [#tpu.dimension_semantics<parallel>, #tpu.dimension_semantics<arbitrary>], iteration_bounds = array<i64: 2, 1>, scalar_prefetch = 0 : i64, scratch_operands = 0 : i64, tpu.core_type = #tpu.core_type<tc>, window_params = [{transform_indices = @transform_0, window_bounds = array<i64: 10, 8, 128>}, {transform_indices = @transform_1, window_bounds = array<i64: 1, 1, 1>}]} {
    %c0_i32 = arith.constant 0 : i32
    %0 = arith.cmpi eq, %arg1, %c0_i32 : i32
    %1 = arith.extui %0 : i1 to i32
    %c0_i32_0 = arith.constant 0 : i32
    %2 = arith.cmpi ne, %1, %c0_i32_0 : i32
    scf.if %2 {
      %cst_51 = arith.constant 0.000000e+00 : f32
      %152 = vector.broadcast %cst_51 : f32 to vector<1x1x1xf32>
      %c0_52 = arith.constant 0 : index
      %c0_53 = arith.constant 0 : index
      %c0_54 = arith.constant 0 : index
      %153 = vector.load %arg3[%c0_52, %c0_53, %c0_54] : memref<1x1x1xf32, #tpu.memory_space<vmem>>, vector<1x1x1xf32>
      tpu.vector_store %arg3[%c0_52, %c0_53, %c0_54], %152 {strides = array<i32>} : memref<1x1x1xf32, #tpu.memory_space<vmem>>, vector<1x1x1xf32>,
    } else {
    }
    %c0 = arith.constant 0 : index
    %c0_1 = arith.constant 0 : index
    %c0_2 = arith.constant 0 : index
    %3 = vector.load %arg2[%c0, %c0_1, %c0_2] : memref<10x8x128xf32, #tpu.memory_space<vmem>>, vector<1x8x128xf32>
    %4 = vector.shape_cast %3 : vector<1x8x128xf32> to vector<8x128xf32>
    %c1 = arith.constant 1 : index
    %c0_3 = arith.constant 0 : index
    %c0_4 = arith.constant 0 : index
    %5 = vector.load %arg2[%c1, %c0_3, %c0_4] : memref<10x8x128xf32, #tpu.memory_space<vmem>>, vector<1x8x128xf32>
    %6 = vector.shape_cast %5 : vector<1x8x128xf32> to vector<8x128xf32>
    %c2 = arith.constant 2 : index
    %c0_5 = arith.constant 0 : index
    %c0_6 = arith.constant 0 : index
    %7 = vector.load %arg2[%c2, %c0_5, %c0_6] : memref<10x8x128xf32, #tpu.memory_space<vmem>>, vector<1x8x128xf32>
    %8 = vector.shape_cast %7 : vector<1x8x128xf32> to vector<8x128xf32>
    %cst = arith.constant 1.000000e-07 : f32
    %cst_7 = arith.constant 1.000000e+07 : f32
    %9 = vector.broadcast %cst : f32 to vector<8x128xf32>
    %10 = arith.maximumf %9, %8 : vector<8x128xf32>
    %11 = vector.broadcast %cst_7 : f32 to vector<8x128xf32>
    %12 = arith.minimumf %11, %10 : vector<8x128xf32>
    %c3 = arith.constant 3 : index
    %c0_8 = arith.constant 0 : index
    %c0_9 = arith.constant 0 : index
    %13 = vector.load %arg2[%c3, %c0_8, %c0_9] : memref<10x8x128xf32, #tpu.memory_space<vmem>>, vector<1x8x128xf32>
    %14 = vector.shape_cast %13 : vector<1x8x128xf32> to vector<8x128xf32>
    %cst_10 = arith.constant 1.000000e-07 : f32
    %cst_11 = arith.constant 1.000000e+07 : f32
    %15 = vector.broadcast %cst_10 : f32 to vector<8x128xf32>
    %16 = arith.maximumf %15, %14 : vector<8x128xf32>
    %17 = vector.broadcast %cst_11 : f32 to vector<8x128xf32>
    %18 = arith.minimumf %17, %16 : vector<8x128xf32>
    %c4 = arith.constant 4 : index
    %c0_12 = arith.constant 0 : index
    %c0_13 = arith.constant 0 : index
    %19 = vector.load %arg2[%c4, %c0_12, %c0_13] : memref<10x8x128xf32, #tpu.memory_space<vmem>>, vector<1x8x128xf32>
    %20 = vector.shape_cast %19 : vector<1x8x128xf32> to vector<8x128xf32>
    %c5 = arith.constant 5 : index
    %c0_14 = arith.constant 0 : index
    %c0_15 = arith.constant 0 : index
    %21 = vector.load %arg2[%c5, %c0_14, %c0_15] : memref<10x8x128xf32, #tpu.memory_space<vmem>>, vector<1x8x128xf32>
    %22 = vector.shape_cast %21 : vector<1x8x128xf32> to vector<8x128xf32>
    %c6 = arith.constant 6 : index
    %c0_16 = arith.constant 0 : index
    %c0_17 = arith.constant 0 : index
    %23 = vector.load %arg2[%c6, %c0_16, %c0_17] : memref<10x8x128xf32, #tpu.memory_space<vmem>>, vector<1x8x128xf32>
    %24 = vector.shape_cast %23 : vector<1x8x128xf32> to vector<8x128xf32>
    %c7 = arith.constant 7 : index
    %c0_18 = arith.constant 0 : index
    %c0_19 = arith.constant 0 : index
    %25 = vector.load %arg2[%c7, %c0_18, %c0_19] : memref<10x8x128xf32, #tpu.memory_space<vmem>>, vector<1x8x128xf32>
    %26 = vector.shape_cast %25 : vector<1x8x128xf32> to vector<8x128xf32>
    %cst_20 = arith.constant 1.000000e-07 : f32
    %cst_21 = arith.constant 1.000000e+07 : f32
    %27 = vector.broadcast %cst_20 : f32 to vector<8x128xf32>
    %28 = arith.maximumf %27, %26 : vector<8x128xf32>
    %29 = vector.broadcast %cst_21 : f32 to vector<8x128xf32>
    %30 = arith.minimumf %29, %28 : vector<8x128xf32>
    %c8 = arith.constant 8 : index
    %c0_22 = arith.constant 0 : index
    %c0_23 = arith.constant 0 : index
    %31 = vector.load %arg2[%c8, %c0_22, %c0_23] : memref<10x8x128xf32, #tpu.memory_space<vmem>>, vector<1x8x128xf32>
    %32 = vector.shape_cast %31 : vector<1x8x128xf32> to vector<8x128xf32>
    %cst_24 = arith.constant 1.000000e-07 : f32
    %cst_25 = arith.constant 1.000000e+07 : f32
    %33 = vector.broadcast %cst_24 : f32 to vector<8x128xf32>
    %34 = arith.maximumf %33, %32 : vector<8x128xf32>
    %35 = vector.broadcast %cst_25 : f32 to vector<8x128xf32>
    %36 = arith.minimumf %35, %34 : vector<8x128xf32>
    %c9 = arith.constant 9 : index
    %c0_26 = arith.constant 0 : index
    %c0_27 = arith.constant 0 : index
    %37 = vector.load %arg2[%c9, %c0_26, %c0_27] : memref<10x8x128xf32, #tpu.memory_space<vmem>>, vector<1x8x128xf32>
    %38 = vector.shape_cast %37 : vector<1x8x128xf32> to vector<8x128xf32>
    %39 = math.cos %20 : vector<8x128xf32>
    %40 = math.sin %20 : vector<8x128xf32>
    %cst_28 = arith.constant 5.000000e-01 : f32
    %41 = vector.broadcast %cst_28 : f32 to vector<8x128xf32>
    %42 = arith.mulf %41, %12 : vector<8x128xf32>
    %43 = arith.mulf %42, %42 : vector<8x128xf32>
    %cst_29 = arith.constant 5.000000e-01 : f32
    %44 = vector.broadcast %cst_29 : f32 to vector<8x128xf32>
    %45 = arith.mulf %44, %18 : vector<8x128xf32>
    %46 = arith.mulf %45, %45 : vector<8x128xf32>
    %47 = arith.mulf %39, %39 : vector<8x128xf32>
    %48 = arith.mulf %47, %43 : vector<8x128xf32>
    %49 = arith.mulf %40, %40 : vector<8x128xf32>
    %50 = arith.mulf %49, %46 : vector<8x128xf32>
    %51 = arith.addf %48, %50 : vector<8x128xf32>
    %52 = arith.mulf %39, %40 : vector<8x128xf32>
    %53 = arith.subf %43, %46 : vector<8x128xf32>
    %54 = arith.mulf %52, %53 : vector<8x128xf32>
    %55 = arith.mulf %40, %40 : vector<8x128xf32>
    %56 = arith.mulf %55, %43 : vector<8x128xf32>
    %57 = arith.mulf %39, %39 : vector<8x128xf32>
    %58 = arith.mulf %57, %46 : vector<8x128xf32>
    %59 = arith.addf %56, %58 : vector<8x128xf32>
    %60 = math.cos %38 : vector<8x128xf32>
    %61 = math.sin %38 : vector<8x128xf32>
    %cst_30 = arith.constant 5.000000e-01 : f32
    %62 = vector.broadcast %cst_30 : f32 to vector<8x128xf32>
    %63 = arith.mulf %62, %30 : vector<8x128xf32>
    %64 = arith.mulf %63, %63 : vector<8x128xf32>
    %cst_31 = arith.constant 5.000000e-01 : f32
    %65 = vector.broadcast %cst_31 : f32 to vector<8x128xf32>
    %66 = arith.mulf %65, %36 : vector<8x128xf32>
    %67 = arith.mulf %66, %66 : vector<8x128xf32>
    %68 = arith.mulf %60, %60 : vector<8x128xf32>
    %69 = arith.mulf %68, %64 : vector<8x128xf32>
    %70 = arith.mulf %61, %61 : vector<8x128xf32>
    %71 = arith.mulf %70, %67 : vector<8x128xf32>
    %72 = arith.addf %69, %71 : vector<8x128xf32>
    %73 = arith.mulf %60, %61 : vector<8x128xf32>
    %74 = arith.subf %64, %67 : vector<8x128xf32>
    %75 = arith.mulf %73, %74 : vector<8x128xf32>
    %76 = arith.mulf %61, %61 : vector<8x128xf32>
    %77 = arith.mulf %76, %64 : vector<8x128xf32>
    %78 = arith.mulf %60, %60 : vector<8x128xf32>
    %79 = arith.mulf %78, %67 : vector<8x128xf32>
    %80 = arith.addf %77, %79 : vector<8x128xf32>
    %81 = arith.subf %4, %22 : vector<8x128xf32>
    %82 = arith.mulf %81, %81 : vector<8x128xf32>
    %83 = arith.subf %6, %24 : vector<8x128xf32>
    %84 = arith.mulf %83, %83 : vector<8x128xf32>
    %85 = arith.addf %82, %84 : vector<8x128xf32>
    %86 = arith.addf %51, %59 : vector<8x128xf32>
    %87 = arith.addf %72, %80 : vector<8x128xf32>
    %88 = arith.addf %86, %87 : vector<8x128xf32>
    %89 = arith.mulf %51, %72 : vector<8x128xf32>
    %cst_32 = arith.constant 2.000000e+00 : f32
    %90 = vector.broadcast %cst_32 : f32 to vector<8x128xf32>
    %91 = arith.mulf %90, %54 : vector<8x128xf32>
    %92 = arith.mulf %91, %75 : vector<8x128xf32>
    %93 = arith.addf %89, %92 : vector<8x128xf32>
    %94 = arith.mulf %59, %80 : vector<8x128xf32>
    %95 = arith.addf %93, %94 : vector<8x128xf32>
    %96 = arith.mulf %51, %59 : vector<8x128xf32>
    %97 = arith.mulf %54, %54 : vector<8x128xf32>
    %98 = arith.subf %96, %97 : vector<8x128xf32>
    %99 = arith.mulf %72, %80 : vector<8x128xf32>
    %100 = arith.mulf %75, %75 : vector<8x128xf32>
    %101 = arith.subf %99, %100 : vector<8x128xf32>
    %102 = arith.mulf %98, %101 : vector<8x128xf32>
    %cst_33 = arith.constant 1.000000e-07 : f32
    %103 = vector.broadcast %cst_33 : f32 to vector<8x128xf32>
    %104 = arith.maximumf %102, %103 : vector<8x128xf32>
    %105 = math.sqrt %104 : vector<8x128xf32>
    %cst_34 = arith.constant 2.000000e+00 : f32
    %106 = vector.broadcast %cst_34 : f32 to vector<8x128xf32>
    %107 = arith.mulf %106, %105 : vector<8x128xf32>
    %108 = arith.addf %95, %107 : vector<8x128xf32>
    %cst_35 = arith.constant 1.000000e-07 : f32
    %109 = vector.broadcast %cst_35 : f32 to vector<8x128xf32>
    %110 = arith.maximumf %108, %109 : vector<8x128xf32>
    %111 = math.sqrt %110 : vector<8x128xf32>
    %cst_36 = arith.constant 2.000000e+00 : f32
    %112 = vector.broadcast %cst_36 : f32 to vector<8x128xf32>
    %113 = arith.mulf %112, %111 : vector<8x128xf32>
    %114 = arith.subf %88, %113 : vector<8x128xf32>
    %cst_37 = arith.constant 1.000000e+00 : f32
    %115 = vector.broadcast %cst_37 : f32 to vector<8x128xf32>
    %116 = arith.mulf %115, %114 : vector<8x128xf32>
    %117 = arith.addf %85, %116 : vector<8x128xf32>
    %cst_38 = arith.constant 1.000000e-07 : f32
    %118 = vector.broadcast %cst_38 : f32 to vector<8x128xf32>
    %119 = arith.maximumf %117, %118 : vector<8x128xf32>
    %120 = math.sqrt %119 : vector<8x128xf32>
    %121 = math.sqrt %105 : vector<8x128xf32>
    %122 = math.rsqrt %121 : vector<8x128xf32>
    %cst_39 = arith.constant 5.000000e-01 : f32
    %123 = vector.broadcast %cst_39 : f32 to vector<8x128xf32>
    %124 = arith.mulf %123, %122 : vector<8x128xf32>
    %125 = arith.mulf %120, %124 : vector<8x128xf32>
    %126 = math.log1p %125 : vector<8x128xf32>
    %c1_i32 = arith.constant 1 : i32
    %127 = arith.muli %arg0, %c1_i32 : i32
    %128 = arith.addi %127, %arg1 : i32
    %c8_i32 = arith.constant 8 : i32
    %129 = arith.muli %128, %c8_i32 : i32
    %130 = tpu.iota {dimensions = array<i32: 0>} : vector<8x128xi32>
    %131 = tpu.iota {dimensions = array<i32: 1>} : vector<8x128xi32>
    %132 = vector.broadcast %129 : i32 to vector<8x128xi32>
    %133 = arith.addi %132, %130 : vector<8x128xi32>
    %c128_i32 = arith.constant 128 : i32
    %134 = vector.broadcast %c128_i32 : i32 to vector<8x128xi32>
    %135 = arith.muli %133, %134 : vector<8x128xi32>
    %136 = arith.addi %135, %131 : vector<8x128xi32>
    %c8_i32_40 = arith.constant 8 : i32
    %137 = vector.broadcast %c8_i32_40 : i32 to vector<8x128xi32>
    %138 = arith.cmpi slt, %136, %137 : vector<8x128xi32>
    %cst_41 = arith.constant 0.000000e+00 : f32
    %139 = vector.broadcast %cst_41 : f32 to vector<8x128xf32>
    %140 = arith.select %138, %126, %139 : vector<8x128xi1>, vector<8x128xf32>
    %c0_42 = arith.constant 0 : index
    %c0_43 = arith.constant 0 : index
    %c0_44 = arith.constant 0 : index
    %141 = vector.load %arg3[%c0_42, %c0_43, %c0_44] : memref<1x1x1xf32, #tpu.memory_space<vmem>>, vector<1x1x1xf32>
    %142 = vector.shape_cast %140 : vector<8x128xf32> to vector<1x8x128xf32>
    %cst_45 = arith.constant dense<0.000000e+00> : vector<1xf32>
    %143 = vector.multi_reduction <add>, %142, %cst_45 [1, 2] : vector<1x8x128xf32> to vector<1xf32>
    %144 = vector.shape_cast %143 : vector<1xf32> to vector<1x1x1xf32>
    %145 = vector.extract %144[0, 0, 0] : f32 from vector<1x1x1xf32>
    %146 = vector.broadcast %145 : f32 to vector<1x1x1xf32>
    %147 = arith.addf %141, %146 : vector<1x1x1xf32>
    %c0_46 = arith.constant 0 : index
    %c0_47 = arith.constant 0 : index
    %c0_48 = arith.constant 0 : index
    %148 = vector.load %arg3[%c0_46, %c0_47, %c0_48] : memref<1x1x1xf32, #tpu.memory_space<vmem>>, vector<1x1x1xf32>
    tpu.vector_store %arg3[%c0_46, %c0_47, %c0_48], %147 {strides = array<i32>} : memref<1x1x1xf32, #tpu.memory_space<vmem>>, vector<1x1x1xf32>,
    %c0_i32_49 = arith.constant 0 : i32
    %149 = arith.cmpi eq, %arg1, %c0_i32_49 : i32
    %150 = arith.extui %149 : i1 to i32
    %c0_i32_50 = arith.constant 0 : i32
    %151 = arith.cmpi ne, %150, %c0_i32_50 : i32
    scf.if %151 {
      %c0_51 = arith.constant 0 : index
      %c0_52 = arith.constant 0 : index
      %c0_53 = arith.constant 0 : index
      %152 = vector.load %arg3[%c0_51, %c0_52, %c0_53] : memref<1x1x1xf32, #tpu.memory_space<vmem>>, vector<1x1x1xf32>
      %cst_54 = arith.constant 1.250000e-01 : f32
      %153 = vector.broadcast %cst_54 : f32 to vector<1x1x1xf32>
      %154 = arith.mulf %152, %153 : vector<1x1x1xf32>
      %c0_55 = arith.constant 0 : index
      %c0_56 = arith.constant 0 : index
      %c0_57 = arith.constant 0 : index
      %155 = vector.load %arg3[%c0_55, %c0_56, %c0_57] : memref<1x1x1xf32, #tpu.memory_space<vmem>>, vector<1x1x1xf32>
      tpu.vector_store %arg3[%c0_55, %c0_56, %c0_57], %154 {strides = array<i32>} : memref<1x1x1xf32, #tpu.memory_space<vmem>>, vector<1x1x1xf32>,
    } else {
    }
    return
  }
  func.func @transform_0(%arg0: i32, %arg1: i32) -> (i32, i32, i32) {
    %c1_i32 = arith.constant 1 : i32
    %0 = arith.muli %arg0, %c1_i32 : i32
    %1 = arith.addi %0, %arg1 : i32
    %c0_i32 = arith.constant 0 : i32
    %c0_i32_0 = arith.constant 0 : i32
    %c0_i32_1 = arith.constant 0 : i32
    return %c0_i32, %1, %c0_i32_0 : i32, i32, i32
  }
  func.func @transform_1(%arg0: i32, %arg1: i32) -> (i32, i32, i32) {
    %c0_i32 = arith.constant 0 : i32
    %c0_i32_0 = arith.constant 0 : i32
    %c0_i32_1 = arith.constant 0 : i32
    return %arg0, %c0_i32, %c0_i32_0 : i32, i32, i32
  }
}

</mosaic_0001>

<bundles_post_ra>
// kernel: tpu_custom_call.1
= control target key start
LH: loop header
LB: loop body
LE: loop exit
PB: predicated region body
PF: predicated region fallthrough
CT: control target
= control target key end

     0   :  { %6 = vsyncpa [#allocation3], 0  ;;  %s1247_s0 = inlined_call_operand.hbm [shape: f32[10,16,128], index: 0, kind: input, shape index: {}]   ;;  %s1248_s1 = inlined_call_operand.vmem [shape: f32[2,1,1], index: 1, kind: output, shape index: {}]  }
   0x1   :  { %8 = vsyncpa [#allocation3 + $0x1], 0  ;;  %s1028_s6 = smov 0   ;;  %s1030_s7 = smov 0  }
   0x2   :  { %s1032_s8 = smov 0   ;;  %s1034_s9 = smov 0  }
   0x3   :  { %s1036_s10 = smov 0   ;;  %s1038_s11 = smov 0  }
   0x4 LB: > { %s794_s12 = sadd.s32 4294967295, %s1005_s11   ;;  %s26_s13 = sadd.s32 1, %s1001_s10  ;;  %s1005_s11 = sphi %s1038_s11, %s14_s11   ;;  %s1001_s10 = sphi %s1036_s10, %s1256_s10   ;;  %s997_s9 = sphi %s1034_s9, %s1255_s9   ;;  %s993_s8 = sphi %s1032_s8, %s1254_s8   ;;  %s989_s7 = sphi %s1030_s7, %s1253_s7   ;;  %s985_s6 = sphi %s1028_s6, %s1252_s6  }
   0x5   : > { %p28_p0 = scmp.ge.s32.totalorder %s26_s13, 2  ;;  %s35_s14 = sadd.s32 1, %s993_s8 }
   0x6   : > { %p42_p1 = scmp.ne.s32.totalorder %s993_s8, %s989_s7  ;;  %p43_p2 = scmp.eq.s32.totalorder %s1005_s11, 0 }
   0x7   : > { %s1258_s13 = smov (%p28_p0, %s26_s13), 0  ;;  %p48_p4 = scmp.ne.s32.totalorder %s989_s7, %s985_s6 }
   0x8   : > { %p44_p3 = por %p43_p2, %p42_p1  ;;  %s32_s15 = ssub.s32 %s1001_s10, %s1258_s13 }
   0x9   : > { %p49_p5 = scmp.eq.s32.totalorder %s794_s12, 0  ;;  %p33_p6 = scmp.eq.s32.totalorder %s32_s15, 0 }
   0xa   : > { %p846_p8 = scmp.lt.s32.totalorder %s1005_s11, 2  ;;  %s98_s18 = sand.u32 1, %s993_s8  }
   0xb   : > { %p1067_p7 = por %p49_p5, %p48_p4  ;;  %s798_s19 = sshll.u32 %s1001_s10, 7 }
   0xc   : > { %s1073_s17 = scalar_select %p33_p6, %s993_s8, %s35_s14  }
   0xd   : > { %s828_s20 = smul.u32 80, %s98_s18  ;;  %s1080_s23 = scalar_lea.hbm %s1247_s0, %s798_s19 }
   0xe   : > { %p1082_p9 = pnand %p846_p8, %p44_p3  ;;  %s1089_s27 = scalar_lea.sflag [#allocation3], %s98_s18 }
   0xf   : > { %s102_s25 = scalar_lea.vmem [#allocation2], %s828_s20  ;;  %s925_s28 = scalar_lea.hbm %s1080_s23, 1280 }
  0x10   : > { %s109_s26 = sshll.u32 %s102_s25, 4  ;;  %p926_p11 = scmp.ne.s32.totalorder %s1080_s23, %s925_s28  ;;  %s1086_s26 = int_to_ptr.vmem [resolvable:$true] %s109_s26 }
  0x11   : > { %p927_p12 = pneg %p1082_p9  ;;  %s930_s2 = scalar_lea.hbm %s1247_s0, 2560 }
  0x12   : > { %p931_p1 = scmp.lt.u32.totalorder %s1080_s23, %s1247_s0  ;;  %p932_p2 = scmp.lt.u32.totalorder %s930_s2, %s925_s28 }
  0x13   : > { %p928_p13 = pnand %p927_p12, %p926_p11  ;;  %p934_p4 = scmp.lt.u32.totalorder %s925_s28, %s1080_s23 }
  0x14   : > { %p933_p3 = por %p932_p2, %p931_p1 }
  0x15   : > { %p929_p0 = pneg %p928_p13 }
  0x16   : > { %p935_p5 = por %p934_p4, %p933_p3 }
  0x18   : > { %p936_p6 = pnand %p935_p5, %p929_p0 }
  0x1a   : > { %939 = shalt.err (!%p936_p6)
}
  0x1b   : > { %s940_s5 = scalar_lea.vmem %s1086_s26, 1280  ;;  %s1007_s6 = smov [#allocation2]  }
  0x1c   : > { %p941_p8 = scmp.ne.s32.totalorder %s1086_s26, %s940_s5  ;;  %s945_s12 = sshll.u32 %s1007_s6, 4  ;;  %s946_s12 = int_to_ptr.vmem [resolvable:$false] %s945_s12 }
  0x1d   : > { %s947_s14 = scalar_lea.vmem %s946_s12, 2560  ;;  %p948_p10 = scmp.lt.s32.totalorder %s1086_s26, %s946_s12 }
  0x1e   : > { %p943_p11 = pnand %p941_p8, %p927_p12  ;;  %p949_p1 = scmp.lt.s32.totalorder %s947_s14, %s940_s5 }
  0x20   : > { %p944_p13 = pneg %p943_p11  ;;  %p950_p2 = por %p949_p1, %p948_p10 }
  0x22   : > { %p951_p3 = pnand %p950_p2, %p944_p13 }
  0x24   : > { %954 = shalt.err (!%p951_p3)
}
  0x25   : > { %s1008_s15 = smov 256   ;;  %s1009_s18 = smov 128  }
  0x26   : > { %s1010_s19 = smov 8   ;;  %p117_p12 = scmp.lt.s32.totalorder %s1005_s11, 3 }
  0x27   : > { %845 = dma.hbm_to_vmem [thread:$0]  (!%p1082_p9), %s1080_s23, 1280, %s1086_s26, %s1089_s27, %s1008_s15, %s1009_s18, %s1010_s19  }
  0x28   : > { %p1251_p0 = scmp.ge.s32.totalorder %s1005_s11, 1 }
  0x2a   : > { %p118_p4 = pnand %p1251_p0, %p117_p12 }
  0x2b   : > { %s123_s20 = sand.u32 (!%p118_p4), 1, %s989_s7  }
  0x2c   : > { %121 = sbr.rel (%p118_p4) target bundleno = 453 (0x1c5), region = 24  ;;  %s124_s22 = scalar_lea.sflag (!%p118_p4), [#allocation3], %s123_s20 }
  0x2d   : > { %s829_s21 = smul.u32 (!%p118_p4), 80, %s123_s20 }
  0x2f   : > { %s1121_s25 = scalar_lea.vmem (!%p118_p4), [#allocation2], %s829_s21 }
  0x33   : > { %980 = dma.done.wait (%p1067_p7), %s124_s22, 1280  }
  0x34   : > { %982 = vsyncadd (%p1067_p7), %s124_s22, 4294966016  ;;  %p145_p9 = scmp.lt.s32.totalorder %s997_s9, 1  ;;  %vm152_vm0 = vcmask 0   ;;  %v1011_v0 = vmov 0.0   ;;  %v1137_v1 = vld [vmem:[%s1121_s25 + $0x20] sm:$0xff]  ;;  %v1140_v2 = vld [vmem:[%s1121_s25 + $0x48] sm:$0xff] }
  0x35   : > { %v181_v3 = vand.u32 2147483647, %v1137_v1  ;;  %v184_v4 = vand.u32 2139095040, %v1137_v1  ;;  %v403_v7 = vand.u32 2147483647, %v1140_v2  ;;  %v406_v8 = vand.u32 2139095040, %v1140_v2 }
  0x36   : > { %s146_s23 = scalar_select %p145_p9, %s997_s9, 1  ;;  %v1012_v22 = vmov 683565275   ;;  %v1013_v24 = vmov 2475754826   ;;  %vm183_vm15 = vcmp.lt.s32.totalorder %v1137_v1, 0 }
  0x37   : > { %v185_v5 = vshrl.u32 %v184_v4, 23  ;;  %v188_v6 = vand.u32 8388607, %v181_v3  ;;  %v407_v10 = vshrl.u32 %v406_v8, 23  ;;  %v1150_v14 = vand.u32 8388607, %v403_v7 }
  0x38   : > { %s1132_s27 = scalar_lea.vmem %s1248_s1, %s146_s23  ;;  %v1014_v26 = vmov 2131351028   ;;  %v1015_v28 = vmov 2102212464   ;;  %v1016_v30 = vmov 920167782  }
  0x39   : > { %153 = vst.msk [vmem:[%s1132_s27] sm:$0x1] %vm152_vm0, %v1011_v0  ;;  %v809_v9 = vadd.s32 4294967169, %v185_v5  ;;  %v189_v12 = vor.u32 8388608, %v188_v6  ;;  %v817_v13 = vadd.s32 4294967169, %v407_v10  ;;  %v411_v20 = vor.u32 8388608, %v1150_v14 }
  0x3a   : > { %v1017_v37 = vmov 1326507024   ;;  %s825_s16 = sshll.u32 %s997_s9, 3 }
  0x3b   : > { %v191_v11 = vadd.s32 1, %v809_v9  ;;  %v413_v16 = vadd.s32 1, %v817_v13  ;;  %v1152_v19 = vshll.u32 %v189_v12, 8 }
  0x3d   : > { %vm192_vm1 = vcmp.gt.s32.totalorder %v191_v11, 0  ;;  %vm414_vm2 = vcmp.gt.s32.totalorder %v413_v16, 0 }
  0x3e   : > { %v193_v15 = vsel %vm192_vm1, %v191_v11, 0  ;;  %v415_v42 = vsel %vm414_vm2, %v413_v16, 0  ;;  %vm182_vm1 = vcmp.le.f32.partialorder %v181_v3, 0.7853982  ;;  %vm405_vm2 = vcmp.lt.s32.totalorder %v1140_v2, 0 }
  0x3f   : > { %v194_v17 = vshrl.u32 %v193_v15, 5  ;;  %v195_v18 = vand.u32 31, %v193_v15  ;;  %v416_v45 = vshrl.u32 %v415_v42, 5  ;;  %v417_v46 = vand.u32 31, %v415_v42 }
  0x41   : > { %v196_v21 = vsub.s32 32, %v195_v18  ;;  %v198_v23 = vshll.u32 %v1012_v22, %v195_v18  ;;  %v201_v25 = vshll.u32 %v1013_v24, %v195_v18  ;;  %v204_v27 = vshll.u32 %v1014_v26, %v195_v18 }
  0x42   : > { %v207_v29 = vshll.u32 %v1015_v28, %v195_v18  ;;  %v210_v31 = vshll.u32 %v1016_v30, %v195_v18  ;;  %vm213_vm3 = vcmp.lt.s32.totalorder %v194_v17, 1  ;;  %vm214_vm4 = vcmp.lt.s32.totalorder %v194_v17, 2 }
  0x43   : > { %v197_v32 = vshrl.u32 %v1012_v22, %v196_v21  ;;  %v199_v33 = vshrl.u32 %v1013_v24, %v196_v21  ;;  %v202_v34 = vshrl.u32 %v1014_v26, %v196_v21  ;;  %v205_v35 = vshrl.u32 %v1015_v28, %v196_v21 }
  0x44   : > { %v208_v36 = vshrl.u32 %v1016_v30, %v196_v21  ;;  %v211_v38 = vshrl.u32 %v1017_v37, %v196_v21  ;;  %vm215_vm5 = vcmp.lt.s32.totalorder %v194_v17, 3  ;;  %vm216_vm6 = vcmp.lt.s32.totalorder %v194_v17, 4 }
  0x45   : > { %v200_v39 = vor.u32 %v199_v33, %v198_v23  ;;  %v203_v40 = vor.u32 %v202_v34, %v201_v25  ;;  %v206_v41 = vor.u32 %v205_v35, %v204_v27  ;;  %v418_v54 = vsub.s32 32, %v417_v46 }
  0x46   : > { %v209_v43 = vor.u32 %v208_v36, %v207_v29  ;;  %v212_v44 = vor.u32 %v211_v38, %v210_v31  ;;  %v420_v58 = vshll.u32 %v1012_v22, %v417_v46  ;;  %v423_v8 = vshll.u32 %v1013_v24, %v417_v46 }
  0x47   : > { %v217_v47 = vsel %vm213_vm3, %v197_v32, %v200_v39  ;;  %v218_v48 = vsel %vm216_vm6, %v206_v41, 2102212464  ;;  %v221_v49 = vsel %vm213_vm3, %v200_v39, %v203_v40  ;;  %v225_v50 = vsel %vm213_vm3, %v203_v40, %v206_v41 }
  0x48   : > { %v219_v51 = vsel %vm215_vm5, %v203_v40, %v218_v48  ;;  %v222_v52 = vsel %vm216_vm6, %v209_v43, 920167782  ;;  %v226_v53 = vsel %vm216_vm6, %v212_v44, 1326507024  ;;  %v419_v62 = vshrl.u32 %v1012_v22, %v418_v54 }
  0x49   : > { %v220_v55 = vsel %vm214_vm4, %v217_v47, %v219_v51  ;;  %v223_v56 = vsel %vm215_vm5, %v206_v41, %v222_v52  ;;  %v227_v57 = vsel %vm215_vm5, %v209_v43, %v226_v53  ;;  %v421_v6 = vshrl.u32 %v1013_v24, %v418_v54 }
  0x4a   : > { %v224_v59 = vsel %vm214_vm4, %v221_v49, %v223_v56  ;;  %v228_v60 = vsel %vm214_vm4, %v225_v50, %v227_v57  ;;  %v236_v61 = vmul.u32 %v1152_v19, %v220_v55  ;;  %v424_v9 = vshrl.u32 %v1014_v26, %v418_v54 }
  0x4b   : > { %v1167_v63 = vmul.u32.u64.low %v1152_v19, %v228_v60  ;;  %v1168_v0 = vmul.u32.u64.high %v1152_v19, %v228_v60, %v1167_v63  ;;  %v1171_v4 = vmul.u32.u64.low %v1152_v19, %v224_v59  ;;  %v1172_v5 = vmul.u32.u64.high %v1152_v19, %v224_v59, %v1171_v4 }
  0x4c   : > { %v426_v10 = vshll.u32 %v1014_v26, %v417_v46  ;;  %v427_v11 = vshrl.u32 %v1015_v28, %v418_v54  ;;  %v429_v12 = vshll.u32 %v1015_v28, %v417_v46  ;;  %v430_v13 = vshrl.u32 %v1016_v30, %v418_v54 }
  0x4d   : > { %v432_v15 = vshll.u32 %v1016_v30, %v417_v46  ;;  %v422_v16 = vor.u32 %v421_v6, %v420_v58  ;;  %v425_v17 = vor.u32 %v424_v9, %v423_v8  ;;  %v433_v18 = vshrl.u32 %v1017_v37, %v418_v54 }
  0x4e   : > { %vm435_vm7 = vcmp.lt.s32.totalorder %v416_v45, 1  ;;  %vm238_vm8 = vc.u32 %v1168_v0, %v1171_v4  ;;  %v239_v21 = vadd.s32 1, %v1172_v5  ;;  %v428_v22 = vor.u32 %v427_v11, %v426_v10 }
  0x4f   : > { %v451_v19 = vshll.u32 %v411_v20, 8  ;;  %v431_v23 = vor.u32 %v430_v13, %v429_v12  ;;  %v434_v24 = vor.u32 %v433_v18, %v432_v15  ;;  %vm436_vm9 = vcmp.lt.s32.totalorder %v416_v45, 2 }
  0x50   : > { %vm437_vm10 = vcmp.lt.s32.totalorder %v416_v45, 3  ;;  %v240_v25 = vsel %vm238_vm8, %v239_v21, %v1172_v5  ;;  %vm438_vm11 = vcmp.lt.s32.totalorder %v416_v45, 4  ;;  %v439_v26 = vsel %vm435_vm7, %v419_v62, %v422_v16 }
  0x51   : > { %v443_v27 = vsel %vm435_vm7, %v422_v16, %v425_v17  ;;  %v241_v28 = vadd.s32 %v240_v25, %v236_v61  ;;  %v440_v29 = vsel %vm438_vm11, %v428_v22, 2102212464  ;;  %v444_v30 = vsel %vm438_vm11, %v431_v23, 920167782 }
  0x52   : > { %v447_v31 = vsel %vm435_vm7, %v425_v17, %v428_v22  ;;  %v441_v32 = vsel %vm437_vm10, %v425_v17, %v440_v29  ;;  %v445_v33 = vsel %vm437_vm10, %v428_v22, %v444_v30  ;;  %v448_v14 = vsel %vm438_vm11, %v434_v24, 1326507024  ;;  %v801_v24 = vld [vmem:[%s1121_s25 + $0x10] sm:$0xff] }
  0x53   : > { %v242_v20 = vadd.s32 536870912, %v241_v28  ;;  %v446_v34 = vsel %vm436_vm9, %v443_v27, %v445_v33  ;;  %v449_v35 = vsel %vm437_vm10, %v431_v23, %v448_v14  ;;  %v442_v36 = vsel %vm436_vm9, %v439_v26, %v441_v32  ;;  %v802_v27 = vld [vmem:[%s1121_s25 + $0x18] sm:$0xff] }
  0x54   : > { %v450_v37 = vsel %vm436_vm9, %v447_v31, %v449_v35  ;;  %v1185_v38 = vmul.u32.u64.low %v451_v19, %v446_v34  ;;  %v1186_v39 = vmul.u32.u64.high %v451_v19, %v446_v34, %v1185_v38  ;;  %v458_v44 = vmul.u32 %v451_v19, %v442_v36  ;;  %v807_v35 = vld [vmem:[%s1121_s25 + $0x40] sm:$0xff] }
  0x55   : > { %v243_v40 = vshrl.u32 %v242_v20, 30  ;;  %v1188_v41 = vmul.u32.u64.low %v451_v19, %v450_v37  ;;  %v1189_v42 = vmul.u32.u64.high %v451_v19, %v450_v37, %v1188_v41  ;;  %v237_v56 = vadd.s32 %v1171_v4, %v1168_v0  ;;  %v806_v20 = vld [vmem:[%s1121_s25 + $0x38] sm:$0xff] }
  0x56   : > { %v461_v46 = vadd.s32 1, %v1186_v39  ;;  %v159_v33 = vmax.f32 %v801_v24, 1e-07  ;;  %v163_v14 = vmax.f32 %v802_v27, 1e-07  ;;  %vm273_vm10 = vweird.f32 %v1137_v1 }
  0x57   : > { %v244_v43 = vshll.u32 %v243_v40, 30  ;;  %vm460_vm12 = vc.u32 %v1189_v42, %v1185_v38  ;;  %v267_v0 = vsub.s32 4, %v243_v40  ;;  %v459_v4 = vadd.s32 %v1185_v38, %v1189_v42 }
  0x58   : > { %v462_v48 = vsel %vm460_vm12, %v461_v46, %v1186_v39  ;;  %v173_v39 = vmax.f32 %v806_v20, 1e-07  ;;  %v164_v41 = vmin.f32 %v163_v14, 10000000.0  ;;  %v177_v42 = vmax.f32 %v807_v35, 1e-07 }
  0x59   : > { %v245_v47 = vsub.s32 %v241_v28, %v244_v43  ;;  %v463_v50 = vadd.s32 %v462_v48, %v458_v44  ;;  %v268_v23 = vsel %vm183_vm15, %v267_v0, %v243_v40  ;;  %v160_v40 = vmin.f32 %v159_v33, 10000000.0 }
  0x5a   : > { %v270_v30 = vsel %vm182_vm1, 0, %v268_v23  ;;  %vm404_vm3 = vcmp.le.f32.partialorder %v403_v7, 0.7853982 }
  0x5b   : > { %v247_v49 = vsub.s32 0, %v245_v47  ;;  %v464_v51 = vadd.s32 536870912, %v463_v50  ;;  %v377_v36 = vadd.s32 3, %v270_v30  ;;  %v274_v44 = vand.u32 3, %v270_v30 }
  0x5d   : > { %v810_v45 = vmin.u32 %v247_v49, %v245_v47  ;;  %v1194_v53 = vshrl.u32 %v464_v51, 30  ;;  %v378_v46 = vand.u32 3, %v377_v36  ;;  %v174_v49 = vmin.f32 %v173_v39, 10000000.0 }
  0x5e   : > { %v390_v51 = vmul.f32 0.5, %v164_v41  ;;  %vm279_vm4 = vcmp.eq.s32.totalorder %v274_v44, 2  ;;  %vm276_vm6 = vcmp.eq.s32.totalorder %v274_v44, 0  ;;  %vm275_vm8 = vcmp.lt.s32.totalorder %v274_v44, 2 }
  0x5f   : > { %v249_v52 = vclz %v810_v45  ;;  %v466_v55 = vshll.u32 %v1194_v53, 30  ;;  %v489_v38 = vsub.s32 4, %v1194_v53  ;;  %v388_v45 = vmul.f32 0.5, %v160_v40 }
  0x60   : > { %vm383_vm5 = vcmp.eq.s32.totalorder %v378_v46, 2  ;;  %vm380_vm7 = vcmp.eq.s32.totalorder %v378_v46, 0  ;;  %vm379_vm9 = vcmp.lt.s32.totalorder %v378_v46, 2 }
  0x61   : > { %v811_v54 = vadd.s32 4294967294, %v249_v52  ;;  %v467_v58 = vsub.s32 %v463_v50, %v466_v55  ;;  %v490_v48 = vsel %vm405_vm2, %v489_v38, %v1194_v53  ;;  %v178_v50 = vmin.f32 %v177_v42, 10000000.0 }
  0x63   : > { %vm812_vm13 = vcmp.lt.s32.totalorder %v811_v54, 0  ;;  %v469_v62 = vsub.s32 0, %v467_v58 }
  0x64   : > { %v252_v57 = vsel %vm812_vm13, 0, %v811_v54 }
  0x65   : > { %v253_v59 = vsub.s32 32, %v252_v57  ;;  %v254_v60 = vshll.u32 %v245_v47, %v252_v57  ;;  %v257_v61 = vsub.s32 4294967266, %v252_v57  ;;  %v818_v6 = vmin.u32 %v469_v62, %v467_v58 }
  0x67   : > { %v255_v63 = vshrl.u32 %v237_v56, %v253_v59  ;;  %v258_v5 = vadd.s32 127, %v257_v61  ;;  %v471_v10 = vclz %v818_v6  ;;  %v492_v56 = vsel %vm404_vm3, 0, %v490_v48 }
  0x69   : > { %v256_v8 = vor.u32 %v255_v63, %v254_v60  ;;  %v259_v9 = vshll.u32 %v258_v5, 23  ;;  %v819_v13 = vadd.s32 4294967294, %v471_v10  ;;  %v599_v60 = vadd.s32 3, %v492_v56 }
  0x6a   : > { %v389_v63 = vmul.f32 %v388_v45, %v388_v45 }
  0x6b   : > { %v260_v11 = vor.u32 4788187, %v259_v9  ;;  %v263_v12 = vcvt.s32.f32 %v256_v8  ;;  %vm820_vm14 = vcmp.lt.s32.totalorder %v819_v13, 0  ;;  %v391_v8 = vmul.f32 %v390_v51, %v390_v51 }
  0x6c   : > { %v474_v17 = vsel %vm820_vm14, 0, %v819_v13  ;;  %v610_v9 = vmul.f32 0.5, %v174_v49  ;;  %v612_v13 = vmul.f32 0.5, %v178_v50 }
  0x6d   : > { %v261_v15 = vand.u32 2147483647, %v260_v11  ;;  %v475_v18 = vsub.s32 32, %v474_v17  ;;  %v476_v21 = vshll.u32 %v467_v58, %v474_v17  ;;  %v479_v22 = vsub.s32 4294967266, %v474_v17 }
  0x6e   : > { %v613_v17 = vmul.f32 %v612_v13, %v612_v13 }
  0x6f   : > { %v264_v16 = vmul.f32 %v263_v12, %v261_v15  ;;  %v477_v25 = vshrl.u32 %v459_v4, %v475_v18  ;;  %v480_v26 = vadd.s32 127, %v479_v22  ;;  %v496_v12 = vand.u32 3, %v492_v56 }
  0x70   : > { %v600_v15 = vand.u32 3, %v599_v60 }
  0x71   : > { %v265_v19 = vxor.u32 2147483648, %v264_v16  ;;  %v478_v31 = vor.u32 %v477_v25, %v476_v21  ;;  %v481_v32 = vshll.u32 %v480_v26, 23  ;;  %vm497_vm11 = vcmp.lt.s32.totalorder %v496_v12, 2 }
  0x72   : > { %vm498_vm12 = vcmp.eq.s32.totalorder %v496_v12, 0  ;;  %vm501_vm13 = vcmp.eq.s32.totalorder %v496_v12, 2  ;;  %vm601_vm14 = vcmp.lt.s32.totalorder %v600_v15, 2  ;;  %v805_v12 = vld [vmem:[%s1121_s25 + $0x30] sm:$0xff] }
  0x73   : > { %v266_v28 = vsel %vm183_vm15, %v265_v19, %v264_v16  ;;  %v482_v34 = vor.u32 4788187, %v481_v32  ;;  %v485_v3 = vcvt.s32.f32 %v478_v31  ;;  %v398_v16 = vsub.f32 %v389_v63, %v391_v8 }
  0x74   : > { %v269_v29 = vsel %vm182_vm1, %v1137_v1, %v266_v28  ;;  %v611_v1 = vmul.f32 %v610_v9, %v610_v9  ;;  %vm605_vm15 = vcmp.eq.s32.totalorder %v600_v15, 2  ;;  %vm602_vm1 = vcmp.eq.s32.totalorder %v600_v15, 0  ;;  %v154_v9 = vld [vmem:[%s1121_s25] sm:$0xff] }
  0x75   : > { %905 = vcosq.f32 %v269_v29  ;;  %v483_v37 = vand.u32 2147483647, %v482_v34 }
  0x76   : > { %907 = vsinq.f32 %v269_v29  ;;  %v620_v20 = vsub.f32 %v611_v1, %v613_v17 }
  0x77   : > { %v486_v43 = vmul.f32 %v485_v3, %v483_v37 }
  0x79   : > { %v487_v47 = vxor.u32 2147483648, %v486_v43 }
  0x7b   : > { %v488_v52 = vsel %vm405_vm2, %v487_v47, %v486_v43  ;;  %vm495_vm2 = vweird.f32 %v1140_v2 }
  0x7c   : > { %v491_v55 = vsel %vm404_vm3, %v1140_v2, %v488_v52 }
  0x7d   : > { %909 = vcosq.f32 %v491_v55 }
  0x7e   : > { %911 = vsinq.f32 %v491_v55 }
  0x7f   : > { %v906_v54 = vpop.eup %905 }
  0x80   : > { %v908_v57 = vpop.eup %907  ;;  %v280_v58 = vxor.u32 2147483648, %v906_v54 }
  0x81   : > { %v277_v7 = vxor.u32 2147483648, %v908_v57 }
  0x82   : > { %v281_v53 = vsel %vm279_vm4, %v280_v58, %v908_v57  ;;  %v385_v59 = vsel %vm383_vm5, %v280_v58, %v908_v57 }
  0x83   : > { %v278_v61 = vsel %vm276_vm6, %v906_v54, %v277_v7  ;;  %v382_v62 = vsel %vm380_vm7, %v906_v54, %v277_v7 }
  0x84   : > { %v282_v5 = vsel %vm275_vm8, %v278_v61, %v281_v53  ;;  %v386_v6 = vsel %vm379_vm9, %v382_v62, %v385_v59 }
  0x85   : > { %v283_v10 = vsel %vm273_vm10, nan, %v282_v5  ;;  %v387_v11 = vsel %vm273_vm10, nan, %v386_v6 }
  0x86   : > { %v392_v0 = vmul.f32 %v283_v10, %v283_v10  ;;  %v394_v4 = vmul.f32 %v387_v11, %v387_v11  ;;  %v397_v19 = vmul.f32 %v387_v11, %v283_v10  ;;  %v804_v10 = vld [vmem:[%s1121_s25 + $0x28] sm:$0xff] }
  0x87   : > { %v910_v18 = vpop.eup %909  ;;  %v800_v11 = vld [vmem:[%s1121_s25 + $0x8] sm:$0xff]  ;;  %v625_v13 = vsub.f32 %v154_v9, %v804_v10 }
  0x88   : > { %v912_v21 = vpop.eup %911  ;;  %v393_v22 = vmul.f32 %v392_v0, %v389_v63  ;;  %v502_v23 = vxor.u32 2147483648, %v910_v18  ;;  %v395_v24 = vmul.f32 %v394_v4, %v391_v8  ;;  %v400_v25 = vmul.f32 %v394_v4, %v389_v63 }
  0x89   : > { %v401_v26 = vmul.f32 %v392_v0, %v391_v8  ;;  %v499_v27 = vxor.u32 2147483648, %v912_v21  ;;  %v399_v32 = vmul.f32 %v398_v16, %v397_v19  ;;  %v627_v15 = vsub.f32 %v800_v11, %v805_v12 }
  0x8a   : > { %v503_v28 = vsel %vm501_vm13, %v502_v23, %v912_v21  ;;  %v607_v29 = vsel %vm605_vm15, %v502_v23, %v912_v21  ;;  %v396_v34 = vadd.f32 %v395_v24, %v393_v22 }
  0x8b   : > { %v500_v30 = vsel %vm498_vm12, %v910_v18, %v499_v27  ;;  %v604_v31 = vsel %vm602_vm1, %v910_v18, %v499_v27  ;;  %v402_v3 = vadd.f32 %v401_v26, %v400_v25  ;;  %v640_v46 = vmul.f32 %v399_v32, %v399_v32 }
  0x8c   : > { %v504_v33 = vsel %vm497_vm11, %v500_v30, %v503_v28  ;;  %v608_v14 = vsel %vm601_vm14, %v604_v31, %v607_v29  ;;  %v634_v55 = vmul.f32 2.0, %v399_v32  ;;  %v628_v21 = vmul.f32 %v627_v15, %v627_v15 }
  0x8d   : > { %v505_v35 = vsel %vm495_vm2, nan, %v504_v33  ;;  %v609_v36 = vsel %vm495_vm2, nan, %v608_v14  ;;  %v639_v44 = vmul.f32 %v402_v3, %v396_v34  ;;  %v630_v4 = vadd.f32 %v402_v3, %v396_v34 }
  0x8e   : > { %v614_v37 = vmul.f32 %v505_v35, %v505_v35  ;;  %v616_v38 = vmul.f32 %v609_v36, %v609_v36  ;;  %v619_v39 = vmul.f32 %v609_v36, %v505_v35 }
  0x8f   : > { %v641_v50 = vsub.f32 %v639_v44, %v640_v46 }
  0x90   : > { %v615_v40 = vmul.f32 %v614_v37, %v611_v1  ;;  %v617_v2 = vmul.f32 %v616_v38, %v613_v17  ;;  %v621_v41 = vmul.f32 %v620_v20, %v619_v39  ;;  %v622_v42 = vmul.f32 %v616_v38, %v611_v1 }
  0x91   : > { %v623_v43 = vmul.f32 %v614_v37, %v613_v17  ;;  %v626_v17 = vmul.f32 %v625_v13, %v625_v13 }
  0x92   : > { %v618_v47 = vadd.f32 %v617_v2, %v615_v40  ;;  %v643_v49 = vmul.f32 %v621_v41, %v621_v41  ;;  %v635_v57 = vmul.f32 %v634_v55, %v621_v41  ;;  %v700_v2 = vstv %s825_s16 }
  0x93   : > { %v624_v48 = vadd.f32 %v623_v43, %v622_v42  ;;  %v629_v27 = vadd.f32 %v628_v21, %v626_v17 }
  0x94   : > { %v633_v56 = vmul.f32 %v618_v47, %v396_v34 }
  0x95   : > { %v642_v45 = vmul.f32 %v624_v48, %v618_v47  ;;  %v637_v7 = vmul.f32 %v624_v48, %v402_v3  ;;  %v631_v16 = vadd.f32 %v624_v48, %v618_v47  ;;  %v696_v3 = vlaneseq }
  0x96   : > { %v636_v58 = vadd.f32 %v635_v57, %v633_v56 }
  0x97   : > { %v644_v51 = vsub.f32 %v642_v45, %v643_v49  ;;  %v632_v23 = vadd.f32 %v631_v16, %v630_v4  ;;  %v697_v39 = vshrl.u32 %v696_v3, 7  ;;  %v699_v44 = vand.u32 127, %v696_v3 }
  0x98   : > { %v638_v61 = vadd.f32 %v637_v7, %v636_v58 }
  0x99   : > { %v645_v52 = vmul.f32 %v644_v51, %v641_v50  ;;  %v701_v42 = vadd.s32 %v700_v2, %v697_v39 }
  0x9b   : > { %v646_v54 = vmax.f32 %v645_v52, 1e-07  ;;  %v702_v46 = vmul.u32 128, %v701_v42 }
  0x9d   : > { %913 = vrsqrt.f32 %v646_v54  ;;  %vm649_vm3 = vcmp.eq.f32.partialorder %v646_v54, inf  ;;  %v652_v59 = vand.u32 2147483648, %v646_v54  ;;  %vm651_vm4 = vcmp.eq.f32.partialorder %v646_v54, 0.0 }
  0x9e   : > { %v703_v49 = vadd.s32 %v702_v46, %v699_v44 }
  0xa0   : > { %vm704_vm12 = vcmp.lt.s32.totalorder %v703_v49, 8 }
  0xa7   : > { %v914_v53 = vpop.eup %913 }
  0xa8   : > { %v648_v60 = vmul.f32 %v914_v53, %v646_v54 }
  0xaa   : > { %v650_v62 = vsel %vm649_vm3, %v646_v54, %v648_v60  ;;  %v706_v60 = vld [vmem:[%s1132_s27] sm:$0x1] }
  0xab   : > { %v653_v63 = vsel %vm651_vm4, %v652_v59, %v650_v62 }
  0xac   : > { %v654_v5 = vmul.f32 2.0, %v653_v63  ;;  %915 = vrsqrt.f32 %v653_v63  ;;  %vm677_vm7 = vcmp.eq.f32.partialorder %v653_v63, inf  ;;  %v680_v26 = vand.u32 2147483648, %v653_v63 }
  0xad   : > { %vm679_vm8 = vcmp.eq.f32.partialorder %v653_v63, 0.0 }
  0xae   : > { %v655_v6 = vadd.f32 %v654_v5, %v638_v61 }
  0xb0   : > { %v656_v8 = vmax.f32 %v655_v6, 1e-07 }
  0xb2   : > { %917 = vrsqrt.f32 %v656_v8  ;;  %vm659_vm5 = vcmp.eq.f32.partialorder %v656_v8, inf  ;;  %v662_v18 = vand.u32 2147483648, %v656_v8  ;;  %vm661_vm6 = vcmp.eq.f32.partialorder %v656_v8, 0.0 }
  0xb6   : > { %v916_v0 = vpop.eup %915 }
  0xb7   : > { %v676_v19 = vmul.f32 %v916_v0, %v653_v63 }
  0xb9   : > { %v678_v29 = vsel %vm677_vm7, %v653_v63, %v676_v19 }
  0xba   : > { %v681_v31 = vsel %vm679_vm8, %v680_v26, %v678_v29 }
  0xbb   : > { %919 = vrsqrt.f32 %v681_v31 }
  0xbc   : > { %v918_v1 = vpop.eup %917 }
  0xbd   : > { %v658_v22 = vmul.f32 %v918_v1, %v656_v8 }
  0xbf   : > { %v660_v24 = vsel %vm659_vm5, %v656_v8, %v658_v22 }
  0xc0   : > { %v663_v25 = vsel %vm661_vm6, %v662_v18, %v660_v24 }
  0xc1   : > { %v664_v28 = vmul.f32 2.0, %v663_v25 }
  0xc3   : > { %v665_v30 = vsub.f32 %v632_v23, %v664_v28 }
  0xc5   : > { %v666_v32 = vadd.f32 %v665_v30, %v629_v27  ;;  %v920_v14 = vpop.eup %919 }
  0xc6   : > { %v683_v36 = vmul.f32 0.5, %v920_v14 }
  0xc7   : > { %v667_v33 = vmax.f32 %v666_v32, 1e-07 }
  0xc9   : > { %921 = vrsqrt.f32 %v667_v33  ;;  %vm670_vm9 = vcmp.eq.f32.partialorder %v667_v33, inf  ;;  %v673_v34 = vand.u32 2147483648, %v667_v33  ;;  %vm672_vm10 = vcmp.eq.f32.partialorder %v667_v33, 0.0 }
  0xd3   : > { %v922_v20 = vpop.eup %921 }
  0xd4   : > { %v669_v35 = vmul.f32 %v922_v20, %v667_v33 }
  0xd6   : > { %v671_v37 = vsel %vm670_vm9, %v667_v33, %v669_v35 }
  0xd7   : > { %v674_v38 = vsel %vm672_vm10, %v673_v34, %v671_v37 }
  0xd8   : > { %v684_v40 = vmul.f32 %v683_v36, %v674_v38 }
  0xda   : > { %v685_v41 = vadd.f32 1.0, %v684_v40  ;;  %v688_v43 = vmul.f32 -0.5, %v684_v40  ;;  %v691_v48 = vand.u32 2147483647, %v684_v40 }
  0xdc   : > { %923 = vlog2.f32 %v685_v41  ;;  %v689_v47 = vadd.f32 1.0, %v688_v43  ;;  %vm692_vm11 = vcmp.lt.f32.partialorder %v691_v48, 0.0004427343 }
  0xde   : > { %v690_v50 = vmul.f32 %v689_v47, %v684_v40 }
  0xe6   : > { %v924_v45 = vpop.eup %923 }
  0xe7   : > { %v687_v51 = vmul.f32 0.6931472, %v924_v45 }
  0xe9   : > { %v693_v52 = vsel %vm692_vm11, %v690_v50, %v687_v51 }
  0xea   : > { %v705_v54 = vsel %vm704_vm12, %v693_v52, 0.0 }
  0xeb   : > { %707 = vadd.xlane.f32.xlu0 %v705_v54 }
 0x178   : > { %v708_v55 = vpop.xlane.xlu0 %707 }
 0x179   : > { %v709_v56 = vrot.slane %v708_v55, 4 }
 0x17b   : > { %v710_v57 = vadd.f32 %v709_v56, %v708_v55 }
 0x17d   : > { %v711_v58 = vrot.slane %v710_v57, 2 }
 0x17f   : > { %v712_v7 = vadd.f32 %v711_v58, %v710_v57 }
 0x181   : > { %v713_v53 = vrot.slane %v712_v7, 1 }
 0x183   : > { %v714_v59 = vadd.f32 %v713_v53, %v712_v7 }
 0x185   : > { %838 = vpush %v714_v59 }
 0x1b6   : > { %s839_s9 = spop %838 }
 0x1b7   : > { %v716_v61 = vstv %s839_s9 }
 0x1b8   : > { %v717_v62 = vadd.f32 %v716_v61, %v706_v60 }
 0x1ba   : > { %719 = vst.msk [vmem:[%s1132_s27] sm:$0x1] %vm152_vm0, %v717_v62 }
 0x1c1   : > { %v723_v63 = vld [vmem:[%s1132_s27] sm:$0x1] }
 0x1c2   : > { %v724_v5 = vmul.f32 0.125, %v723_v63 }
 0x1c4   : > { %725 = vst.msk [vmem:[%s1132_s27] sm:$0x1] %vm152_vm0, %v724_v5 }
 0x1c5 PF: > { %s14_s11 = sadd.s32 1, %s1005_s11   ;;  %s1252_s6 = smov %s989_s7 }
 0x1c6   : > { %p11_p7 = scmp.ge.s32.totalorder %s14_s11, 4   ;;  %s1253_s7 = smov %s993_s8 }
 0x1c7   : > { %s1254_s8 = smov %s1073_s17  ;;  %s1255_s9 = smov %s1001_s10 }
 0x1c8   : > { %s1256_s10 = smov %s1258_s13  ;;  %13 = sbr.rel (!%p11_p7) target bundleno = 4 (0x4), region = 81 }
 0x1cf   :  { %743 = vsyncpa [#allocation3], 1 }
 0x1d0   :  { %745 = vsyncpa [#allocation3 + $0x1], 1 }

</bundles_post_ra>
